<compile_context>
chip_gen: v7x
topology: tpu7x:2x2x1
jax: 0.10.0
libtpu: 0.0.40
codegen_flags: <defaults>
</compile_context>

<pallas_src>
import functools
import math

import jax
import jax.numpy as jnp
import numpy as np
from jax import lax
from jax.experimental import pallas as pl
from jax.experimental.pallas import tpu as pltpu


def _round_up(x, m):
    return ((x + m - 1) // m) * m


def _silhouette_kernel(n_valid, margin, n_chunks, chunk,
                       q_ref, kt_ref, sqq_ref, sqk_ref, labq_ref, labk_ref,
                       onehot_ref, counts_ref, out_ref):
    tq = q_ref.shape[0]
    c_pad = counts_ref.shape[1]
    tile = pl.program_id(0)

    lab_q = labq_ref[...]                                     # (TQ, 1) i32
    sq_q = sqq_ref[...]                                       # (TQ, 1) f32
    row_ids = tile * tq + lax.broadcasted_iota(jnp.int32, (tq, 1), 0)

    inf = jnp.float32(jnp.inf)
    int_max = jnp.int32(2 ** 31 - 1)

    def chunk_body(c, carry):
        s_clust, run_min, run_lab = carry
        off = pl.multiple_of(c * chunk, chunk)
        kt_c = kt_ref[:, pl.ds(off, chunk)]                   # (Dp, chunk)
        sq_k = sqk_ref[:, pl.ds(off, chunk)]                  # (1, chunk)
        lab_k = labk_ref[:, pl.ds(off, chunk)]                # (1, chunk)

        # Gram-form pairwise distances for this (query tile, key chunk).
        g = jnp.dot(q_ref[...], kt_c, preferred_element_type=jnp.float32)
        d = jnp.sqrt(jnp.maximum(sq_q + sq_k - 2.0 * g, 0.0))  # (TQ, chunk)

        col_ids = off + lax.broadcasted_iota(jnp.int32, (1, chunk), 1)
        # Zero the self pair before accumulating sums (Gram cancellation can
        # leave a tiny nonzero diagonal).  Padded key columns have an all-zero
        # one-hot row, so they never reach the per-cluster sums.
        d_sum = jnp.where(row_ids == col_ids, 0.0, d)

        # Per-cluster distance sums on the MXU: (TQ, chunk) @ (chunk, C_pad).
        s_clust = s_clust + jnp.dot(
            d_sum, onehot_ref[pl.ds(off, chunk), :],
            preferred_element_type=jnp.float32)

        # Running nearest sample from a *different*, valid cluster.
        other = jnp.logical_and(lab_k != lab_q, col_ids < n_valid)
        masked_d = jnp.where(other, d, inf)
        c_min = jnp.min(masked_d, axis=-1, keepdims=True)       # (TQ, 1)
        c_lab = jnp.min(jnp.where(masked_d == c_min, lab_k, int_max),
                        axis=-1, keepdims=True)                  # (TQ, 1)
        better = c_min < run_min
        tie = c_min == run_min
        run_lab = jnp.where(
            better, c_lab,
            jnp.where(tie, jnp.minimum(c_lab, run_lab), run_lab))
        run_min = jnp.minimum(run_min, c_min)
        return s_clust, run_min, run_lab

    init = (jnp.zeros((tq, c_pad), jnp.float32),
            jnp.full((tq, 1), inf, dtype=jnp.float32),
            jnp.full((tq, 1), int_max, dtype=jnp.int32))
    if n_chunks == 1:
        s_clust, _, near_lab = chunk_body(jnp.int32(0), init)
    else:
        s_clust, _, near_lab = lax.fori_loop(0, n_chunks, chunk_body, init)

    # Read out own-/nearest-cluster sums and sizes (only C_pad lanes wide).
    counts = counts_ref[...]                                    # (1, C_pad)
    cidx = lax.broadcasted_iota(jnp.int32, (1, c_pad), 1)

    own = cidx == lab_q                                         # (TQ, C_pad)
    intra_sum = jnp.sum(jnp.where(own, s_clust, 0.0), axis=-1, keepdims=True)
    intra_cnt = jnp.sum(jnp.where(own, counts, 0.0), axis=-1,
                        keepdims=True) - 1.0                    # drop self

    near = cidx == near_lab
    near_sum = jnp.sum(jnp.where(near, s_clust, 0.0), axis=-1, keepdims=True)
    near_cnt = jnp.sum(jnp.where(near, counts, 0.0), axis=-1, keepdims=True)

    # Exact divides on (TQ, 1) columns (off the critical path); 0/0 -> NaN
    # matches torch.mean of an empty selection for singleton clusters.
    mean_intra = intra_sum / intra_cnt
    mean_near = near_sum / near_cnt

    out_ref[...] = jnp.maximum(mean_intra - mean_near + jnp.float32(margin),
                               0.0)                             # (TQ, 1)


def _vmem_capacity_bytes():
    try:
        return int(pltpu.get_tpu_info().vmem_capacity_bytes)
    except Exception:
        return 64 * 1024 * 1024     # conservative (v7x per-TC capacity)


def silhouette_margin_loss(features, labels, margin=1.0, tile_rows=256,
                           key_chunk=512):
    """Forward pass of SilhouetteMarginLoss -> scalar loss."""
    n, dim = features.shape
    if tile_rows % 8 != 0:
        raise ValueError("tile_rows must be a multiple of 8")
    if key_chunk % 128 != 0:
        raise ValueError("key_chunk must be a multiple of 128")
    tq = tile_rows
    d_pad = max(_round_up(dim, 128), 128)

    # Key chunk (lane aligned) and a padded N divisible by both the query tile
    # and the key chunk.
    chunk = min(key_chunk, _round_up(n, 128))
    n_pad = _round_up(n, math.lcm(tq, chunk))
    n_tiles = n_pad // tq
    n_chunks = n_pad // chunk

    # Densify labels on the host (the cluster count fixes static shapes), so
    # `labels` must be concrete here.  Padded rows get a sentinel label.
    lab_np = np.asarray(jax.device_get(labels)).reshape(n)
    _, dense = np.unique(lab_np, return_inverse=True)
    num_clusters = int(dense.max()) + 1
    c_pad = max(_round_up(num_clusters, 128), 128)
    sentinel = num_clusters
    lab_p = jnp.asarray(np.concatenate(
        [dense.astype(np.int32),
         np.full((n_pad - n,), sentinel, dtype=np.int32)]))

    # Zero-pad feature lanes/rows (does not change norms or the Gram matrix)
    # and pre-transpose the keys once so the resident buffer is lane-dense
    # along N and the in-kernel dot is a plain NN matmul.
    feats = jnp.pad(features, ((0, n_pad - n), (0, d_pad - dim)))
    keys_t = feats.T                                           # (Dp, Np)

    sq = jnp.sum(jnp.square(feats.astype(jnp.float32)), axis=-1)
    sq_col = sq.reshape(n_pad, 1)
    sq_row = sq.reshape(1, n_pad)
    lab_col = lab_p.reshape(n_pad, 1)
    lab_row = lab_p.reshape(1, n_pad)

    # Cluster one-hot (padded rows / padded cluster columns are all zero) and
    # per-cluster member counts, precomputed once in JAX.
    cids = jnp.arange(c_pad, dtype=jnp.int32)
    onehot = jnp.logical_and(lab_p[:, None] == cids[None, :],
                             cids[None, :] < num_clusters).astype(jnp.float32)
    counts = jnp.sum(onehot, axis=0, keepdims=True)            # (1, C_pad)

    # VMEM budget: single-buffered residents + double-buffered query stream +
    # (TQ, chunk) temporaries, with headroom, capped below physical capacity.
    itemsize = feats.dtype.itemsize
    resident = (d_pad * n_pad * itemsize + n_pad * 8
                + n_pad * c_pad * 4 + c_pad * 4)
    streamed = 2 * (tq * d_pad * itemsize + 3 * tq * 4)
    temps = 8 * tq * chunk * 4 + 2 * tq * c_pad * 4
    need = resident + streamed + temps + (4 << 20)
    cap = _vmem_capacity_bytes()
    vmem_limit = int(min(max(need, 32 << 20), cap - (8 << 20)))

    def resident_spec(shape):
        # Grid-invariant block: single pipeline buffer (no double buffering).
        return pl.BlockSpec(shape, lambda i: (0, 0),
                            pipeline_mode=pl.Buffered(1))

    kernel = functools.partial(_silhouette_kernel, n, float(margin),
                               n_chunks, chunk)
    losses = pl.pallas_call(
        kernel,
        out_shape=jax.ShapeDtypeStruct((n_pad, 1), jnp.float32),
        grid=(n_tiles,),
        in_specs=[
            pl.BlockSpec((tq, d_pad), lambda i: (i, 0)),       # query tile
            resident_spec((d_pad, n_pad)),                     # keys^T
            pl.BlockSpec((tq, 1), lambda i: (i, 0)),           # |q|^2 per row
            resident_spec((1, n_pad)),                         # |k|^2
            pl.BlockSpec((tq, 1), lambda i: (i, 0)),           # query labels
            resident_spec((1, n_pad)),                         # key labels
            resident_spec((n_pad, c_pad)),                     # cluster one-hot
            resident_spec((1, c_pad)),                         # cluster sizes
        ],
        out_specs=pl.BlockSpec((tq, 1), lambda i: (i, 0)),
        compiler_params=pltpu.CompilerParams(
            dimension_semantics=("parallel",),   # shard tiles across TCs
            vmem_limit_bytes=vmem_limit,
        ),
    )(feats, keys_t, sq_col, sq_row, lab_col, lab_row, onehot, counts)

    # Final mean over the real rows in plain JAX (drops padded rows).
    return jnp.mean(losses[:n, 0])


def _reference(features, labels, margin=1.0):
    """NumPy port of the PyTorch forward (ground truth for the sanity check)."""
    f = np.asarray(features, dtype=np.float64)
    l = np.asarray(labels)
    n = f.shape[0]
    d = np.sqrt(((f[:, None, :] - f[None, :, :]) ** 2).sum(-1))
    mi, mn = [], []
    for i in range(n):
        intra = d[i][l == l[i]]
        intra = intra[intra != 0]
        mi.append(intra.mean())
        masked = np.where(l != l[i], d[i], np.inf)
        j = int(np.argmin(masked))
        near = d[i][l == l[j]]
        near = near[near != 0]
        mn.append(near.mean())
    diff = np.array(mi) - np.array(mn)
    return float(np.maximum(diff + margin, 0.0).mean())


if __name__ == "__main__":
    key = jax.random.PRNGKey(0)
    k1, k2, k3, k4 = jax.random.split(key, 4)

    # Case 1: multi-tile grid, single key chunk, row padding.
    N1, D1, C1 = 40, 32, 5                     # 5 clusters x 8 samples
    labels1 = jnp.array([i % C1 for i in range(N1)], dtype=jnp.int32)
    centers1 = 0.25 * jax.random.normal(k1, (C1, D1), dtype=jnp.float32)
    feats1 = centers1[labels1] + jax.random.normal(k2, (N1, D1),
                                                   dtype=jnp.float32)
    loss1 = jax.block_until_ready(
        silhouette_margin_loss(feats1, labels1, margin=1.0, tile_rows=16))
    ref1 = _reference(np.asarray(feats1), np.asarray(labels1), margin=1.0)
    assert np.isfinite(float(loss1)), "kernel produced non-finite loss (1)"
    assert abs(float(loss1) - ref1) <= 5e-3 + 5e-3 * abs(ref1), (float(loss1),
                                                                 ref1)

    # Case 2: multi-chunk key loop (n_chunks > 1) and a multi-tile grid.
    N2, D2, C2 = 300, 48, 6                    # 6 clusters x 50 samples
    labels2 = jnp.array([i % C2 for i in range(N2)], dtype=jnp.int32)
    centers2 = 0.5 * jax.random.normal(k3, (C2, D2), dtype=jnp.float32)
    feats2 = centers2[labels2] + jax.random.normal(k4, (N2, D2),
                                                   dtype=jnp.float32)
    loss2 = jax.block_until_ready(
        silhouette_margin_loss(feats2, labels2, margin=1.0, tile_rows=128,
                               key_chunk=128))
    ref2 = _reference(np.asarray(feats2), np.asarray(labels2), margin=1.0)
    assert np.isfinite(float(loss2)), "kernel produced non-finite loss (2)"
    assert abs(float(loss2) - ref2) <= 5e-3 + 5e-3 * abs(ref2), (float(loss2),
                                                                 ref2)

    print("KERNEL_OK")
</pallas_src>

<mosaic_0001>
module attributes {stable_mosaic.version = 11 : i64} {
  func.func @_silhouette_kernel(%arg0: i32, %arg1: memref<16x128xf32, #tpu.memory_space<vmem>>, %arg2: memref<128x128xf32, #tpu.memory_space<vmem>>, %arg3: memref<16x1xf32, #tpu.memory_space<vmem>>, %arg4: memref<1x128xf32, #tpu.memory_space<vmem>>, %arg5: memref<16x1xi32, #tpu.memory_space<vmem>>, %arg6: memref<1x128xi32, #tpu.memory_space<vmem>>, %arg7: memref<128x128xf32, #tpu.memory_space<vmem>>, %arg8: memref<1x128xf32, #tpu.memory_space<vmem>>, %arg9: memref<16x1xf32, #tpu.memory_space<vmem>>) attributes {dimension_semantics = [#tpu.dimension_semantics<parallel>], iteration_bounds = array<i64: 8>, scalar_prefetch = 0 : i64, scratch_operands = 0 : i64, tpu.core_type = #tpu.core_type<tc>, window_params = [{transform_indices = @transform_0, window_bounds = array<i64: 16, 128>}, {pipeline_mode = #tpu.pipeline_mode<synchronous>, transform_indices = @transform_1, window_bounds = array<i64: 128, 128>}, {transform_indices = @transform_2, window_bounds = array<i64: 16, 1>}, {pipeline_mode = #tpu.pipeline_mode<synchronous>, transform_indices = @transform_3, window_bounds = array<i64: 1, 128>}, {transform_indices = @transform_4, window_bounds = array<i64: 16, 1>}, {pipeline_mode = #tpu.pipeline_mode<synchronous>, transform_indices = @transform_5, window_bounds = array<i64: 1, 128>}, {pipeline_mode = #tpu.pipeline_mode<synchronous>, transform_indices = @transform_6, window_bounds = array<i64: 128, 128>}, {pipeline_mode = #tpu.pipeline_mode<synchronous>, transform_indices = @transform_7, window_bounds = array<i64: 1, 128>}, {transform_indices = @transform_8, window_bounds = array<i64: 16, 1>}]} {
    %c0 = arith.constant 0 : index
    %c0_0 = arith.constant 0 : index
    %0 = vector.load %arg5[%c0, %c0_0] : memref<16x1xi32, #tpu.memory_space<vmem>>, vector<16x1xi32>
    %c0_1 = arith.constant 0 : index
    %c0_2 = arith.constant 0 : index
    %1 = vector.load %arg3[%c0_1, %c0_2] : memref<16x1xf32, #tpu.memory_space<vmem>>, vector<16x1xf32>
    %c16_i32 = arith.constant 16 : i32
    %2 = arith.muli %arg0, %c16_i32 : i32
    %3 = tpu.iota {dimensions = array<i32: 0>} : vector<16x1xi32>
    %4 = vector.broadcast %2 : i32 to vector<16x1xi32>
    %5 = arith.addi %4, %3 : vector<16x1xi32>
    %cst = arith.constant 0.000000e+00 : f32
    %6 = vector.broadcast %cst : f32 to vector<16x128xf32>
    %cst_3 = arith.constant 0x7F800000 : f32
    %7 = vector.broadcast %cst_3 : f32 to vector<16x1xf32>
    %c2147483647_i32 = arith.constant 2147483647 : i32
    %8 = vector.broadcast %c2147483647_i32 : i32 to vector<16x1xi32>
    %c0_i32 = arith.constant 0 : i32
    %c128_i32 = arith.constant 128 : i32
    %9 = arith.muli %c0_i32, %c128_i32 : i32
    %10 = tpu.assume_multiple %9, 128 : i32
    %c0_4 = arith.constant 0 : index
    %11 = arith.index_cast %10 : i32 to index
    %12 = vector.load %arg2[%c0_4, %11] : memref<128x128xf32, #tpu.memory_space<vmem>>, vector<128x128xf32>
    %c0_5 = arith.constant 0 : index
    %13 = arith.index_cast %10 : i32 to index
    %14 = vector.load %arg4[%c0_5, %13] : memref<1x128xf32, #tpu.memory_space<vmem>>, vector<1x128xf32>
    %c0_6 = arith.constant 0 : index
    %15 = arith.index_cast %10 : i32 to index
    %16 = vector.load %arg6[%c0_6, %15] : memref<1x128xi32, #tpu.memory_space<vmem>>, vector<1x128xi32>
    %c0_7 = arith.constant 0 : index
    %c0_8 = arith.constant 0 : index
    %17 = vector.load %arg1[%c0_7, %c0_8] : memref<16x128xf32, #tpu.memory_space<vmem>>, vector<16x128xf32>
    %cst_9 = arith.constant dense<0.000000e+00> : vector<16x128xf32>
    %18 = tpu.matmul %17, %12, %cst_9 {dimension_numbers = #tpu.dot_dimension_numbers<[1], [0], [0], [1], [0, 0, 1, 1], [], []>} : vector<16x128xf32>, vector<128x128xf32>, vector<16x128xf32> -> vector<16x128xf32>
    %19 = vector.broadcast %1 : vector<16x1xf32> to vector<16x128xf32>
    %20 = vector.broadcast %14 : vector<1x128xf32> to vector<16x128xf32>
    %21 = arith.addf %19, %20 : vector<16x128xf32>
    %cst_10 = arith.constant 2.000000e+00 : f32
    %22 = vector.broadcast %cst_10 : f32 to vector<16x128xf32>
    %23 = arith.mulf %22, %18 : vector<16x128xf32>
    %24 = arith.subf %21, %23 : vector<16x128xf32>
    %cst_11 = arith.constant 0.000000e+00 : f32
    %25 = vector.broadcast %cst_11 : f32 to vector<16x128xf32>
    %26 = arith.maximumf %24, %25 : vector<16x128xf32>
    %27 = math.sqrt %26 : vector<16x128xf32>
    %28 = tpu.iota {dimensions = array<i32: 1>} : vector<1x128xi32>
    %29 = vector.broadcast %10 : i32 to vector<1x128xi32>
    %30 = arith.addi %29, %28 : vector<1x128xi32>
    %31 = vector.broadcast %5 : vector<16x1xi32> to vector<16x128xi32>
    %32 = vector.broadcast %30 : vector<1x128xi32> to vector<16x128xi32>
    %33 = arith.cmpi eq, %31, %32 : vector<16x128xi32>
    %cst_12 = arith.constant 0.000000e+00 : f32
    %34 = vector.broadcast %cst_12 : f32 to vector<16x128xf32>
    %35 = arith.select %33, %34, %27 : vector<16x128xi1>, vector<16x128xf32>
    %36 = arith.index_cast %10 : i32 to index
    %c0_13 = arith.constant 0 : index
    %37 = vector.load %arg7[%36, %c0_13] : memref<128x128xf32, #tpu.memory_space<vmem>>, vector<128x128xf32>
    %cst_14 = arith.constant dense<0.000000e+00> : vector<16x128xf32>
    %38 = tpu.matmul %35, %37, %cst_14 {dimension_numbers = #tpu.dot_dimension_numbers<[1], [0], [0], [1], [0, 0, 1, 1], [], []>} : vector<16x128xf32>, vector<128x128xf32>, vector<16x128xf32> -> vector<16x128xf32>
    %39 = arith.addf %6, %38 : vector<16x128xf32>
    %40 = vector.broadcast %16 : vector<1x128xi32> to vector<16x128xi32>
    %41 = vector.broadcast %0 : vector<16x1xi32> to vector<16x128xi32>
    %42 = arith.cmpi ne, %40, %41 : vector<16x128xi32>
    %c40_i32 = arith.constant 40 : i32
    %43 = vector.broadcast %c40_i32 : i32 to vector<1x128xi32>
    %44 = arith.cmpi slt, %30, %43 : vector<1x128xi32>
    %45 = vector.broadcast %44 : vector<1x128xi1> to vector<16x128xi1>
    %46 = arith.andi %42, %45 : vector<16x128xi1>
    %cst_15 = arith.constant 0x7F800000 : f32
    %47 = vector.broadcast %cst_15 : f32 to vector<16x128xf32>
    %48 = arith.select %46, %27, %47 : vector<16x128xi1>, vector<16x128xf32>
    %cst_16 = arith.constant dense<0x7F800000> : vector<16xf32>
    %49 = vector.multi_reduction <minimumf>, %48, %cst_16 [1] : vector<16x128xf32> to vector<16xf32>
    %50 = vector.shape_cast %49 : vector<16xf32> to vector<16x1xf32>
    %51 = vector.broadcast %50 : vector<16x1xf32> to vector<16x128xf32>
    %52 = arith.cmpf oeq, %48, %51 : vector<16x128xf32>
    %c2147483647_i32_17 = arith.constant 2147483647 : i32
    %53 = vector.shape_cast %16 : vector<1x128xi32> to vector<1x128xi32>
    %54 = vector.broadcast %53 : vector<1x128xi32> to vector<16x128xi32>
    %55 = vector.broadcast %c2147483647_i32_17 : i32 to vector<16x128xi32>
    %56 = arith.select %52, %54, %55 : vector<16x128xi1>, vector<16x128xi32>
    %cst_18 = arith.constant dense<2147483647> : vector<16xi32>
    %57 = vector.multi_reduction <minsi>, %56, %cst_18 [1] : vector<16x128xi32> to vector<16xi32>
    %58 = vector.shape_cast %57 : vector<16xi32> to vector<16x1xi32>
    %59 = arith.cmpf olt, %50, %7 : vector<16x1xf32>
    %60 = arith.cmpf oeq, %50, %7 : vector<16x1xf32>
    %61 = arith.minsi %58, %8 : vector<16x1xi32>
    %62 = arith.select %60, %61, %8 : vector<16x1xi1>, vector<16x1xi32>
    %63 = arith.select %59, %58, %62 : vector<16x1xi1>, vector<16x1xi32>
    %c0_19 = arith.constant 0 : index
    %c0_20 = arith.constant 0 : index
    %64 = vector.load %arg8[%c0_19, %c0_20] : memref<1x128xf32, #tpu.memory_space<vmem>>, vector<1x128xf32>
    %65 = tpu.iota {dimensions = array<i32: 1>} : vector<1x128xi32>
    %66 = vector.broadcast %65 : vector<1x128xi32> to vector<16x128xi32>
    %67 = vector.broadcast %0 : vector<16x1xi32> to vector<16x128xi32>
    %68 = arith.cmpi eq, %66, %67 : vector<16x128xi32>
    %cst_21 = arith.constant 0.000000e+00 : f32
    %69 = vector.broadcast %cst_21 : f32 to vector<16x128xf32>
    %70 = arith.select %68, %39, %69 : vector<16x128xi1>, vector<16x128xf32>
    %cst_22 = arith.constant dense<0.000000e+00> : vector<16xf32>
    %71 = vector.multi_reduction <add>, %70, %cst_22 [1] : vector<16x128xf32> to vector<16xf32>
    %72 = vector.shape_cast %71 : vector<16xf32> to vector<16x1xf32>
    %cst_23 = arith.constant 0.000000e+00 : f32
    %73 = vector.shape_cast %64 : vector<1x128xf32> to vector<1x128xf32>
    %74 = vector.broadcast %73 : vector<1x128xf32> to vector<16x128xf32>
    %75 = vector.broadcast %cst_23 : f32 to vector<16x128xf32>
    %76 = arith.select %68, %74, %75 : vector<16x128xi1>, vector<16x128xf32>
    %cst_24 = arith.constant dense<0.000000e+00> : vector<16xf32>
    %77 = vector.multi_reduction <add>, %76, %cst_24 [1] : vector<16x128xf32> to vector<16xf32>
    %78 = vector.shape_cast %77 : vector<16xf32> to vector<16x1xf32>
    %cst_25 = arith.constant 1.000000e+00 : f32
    %79 = vector.broadcast %cst_25 : f32 to vector<16x1xf32>
    %80 = arith.subf %78, %79 : vector<16x1xf32>
    %81 = vector.broadcast %65 : vector<1x128xi32> to vector<16x128xi32>
    %82 = vector.broadcast %63 : vector<16x1xi32> to vector<16x128xi32>
    %83 = arith.cmpi eq, %81, %82 : vector<16x128xi32>
    %cst_26 = arith.constant 0.000000e+00 : f32
    %84 = vector.broadcast %cst_26 : f32 to vector<16x128xf32>
    %85 = arith.select %83, %39, %84 : vector<16x128xi1>, vector<16x128xf32>
    %cst_27 = arith.constant dense<0.000000e+00> : vector<16xf32>
    %86 = vector.multi_reduction <add>, %85, %cst_27 [1] : vector<16x128xf32> to vector<16xf32>
    %87 = vector.shape_cast %86 : vector<16xf32> to vector<16x1xf32>
    %cst_28 = arith.constant 0.000000e+00 : f32
    %88 = vector.shape_cast %64 : vector<1x128xf32> to vector<1x128xf32>
    %89 = vector.broadcast %88 : vector<1x128xf32> to vector<16x128xf32>
    %90 = vector.broadcast %cst_28 : f32 to vector<16x128xf32>
    %91 = arith.select %83, %89, %90 : vector<16x128xi1>, vector<16x128xf32>
    %cst_29 = arith.constant dense<0.000000e+00> : vector<16xf32>
    %92 = vector.multi_reduction <add>, %91, %cst_29 [1] : vector<16x128xf32> to vector<16xf32>
    %93 = vector.shape_cast %92 : vector<16xf32> to vector<16x1xf32>
    %94 = arith.divf %72, %80 : vector<16x1xf32>
    %95 = arith.divf %87, %93 : vector<16x1xf32>
    %96 = arith.subf %94, %95 : vector<16x1xf32>
    %cst_30 = arith.constant 1.000000e+00 : f32
    %97 = vector.broadcast %cst_30 : f32 to vector<16x1xf32>
    %98 = arith.addf %96, %97 : vector<16x1xf32>
    %cst_31 = arith.constant 0.000000e+00 : f32
    %99 = vector.broadcast %cst_31 : f32 to vector<16x1xf32>
    %100 = arith.maximumf %98, %99 : vector<16x1xf32>
    %c0_32 = arith.constant 0 : index
    %c0_33 = arith.constant 0 : index
    %101 = vector.load %arg9[%c0_32, %c0_33] : memref<16x1xf32, #tpu.memory_space<vmem>>, vector<16x1xf32>
    tpu.vector_store %arg9[%c0_32, %c0_33], %100 {strides = array<i32>} : memref<16x1xf32, #tpu.memory_space<vmem>>, vector<16x1xf32>,
    return
  }
  func.func @transform_0(%arg0: i32) -> (i32, i32) {
    %c0_i32 = arith.constant 0 : i32
    %c0_i32_0 = arith.constant 0 : i32
    return %arg0, %c0_i32 : i32, i32
  }
  func.func @transform_1(%arg0: i32) -> (i32, i32) {
    %c0_i32 = arith.constant 0 : i32
    %c0_i32_0 = arith.constant 0 : i32
    %c0_i32_1 = arith.constant 0 : i32
    return %c0_i32, %c0_i32_0 : i32, i32
  }
  func.func @transform_2(%arg0: i32) -> (i32, i32) {
    %c0_i32 = arith.constant 0 : i32
    %c0_i32_0 = arith.constant 0 : i32
    return %arg0, %c0_i32 : i32, i32
  }
  func.func @transform_3(%arg0: i32) -> (i32, i32) {
    %c0_i32 = arith.constant 0 : i32
    %c0_i32_0 = arith.constant 0 : i32
    %c0_i32_1 = arith.constant 0 : i32
    return %c0_i32, %c0_i32_0 : i32, i32
  }
  func.func @transform_4(%arg0: i32) -> (i32, i32) {
    %c0_i32 = arith.constant 0 : i32
    %c0_i32_0 = arith.constant 0 : i32
    return %arg0, %c0_i32 : i32, i32
  }
  func.func @transform_5(%arg0: i32) -> (i32, i32) {
    %c0_i32 = arith.constant 0 : i32
    %c0_i32_0 = arith.constant 0 : i32
    %c0_i32_1 = arith.constant 0 : i32
    return %c0_i32, %c0_i32_0 : i32, i32
  }
  func.func @transform_6(%arg0: i32) -> (i32, i32) {
    %c0_i32 = arith.constant 0 : i32
    %c0_i32_0 = arith.constant 0 : i32
    %c0_i32_1 = arith.constant 0 : i32
    return %c0_i32, %c0_i32_0 : i32, i32
  }
  func.func @transform_7(%arg0: i32) -> (i32, i32) {
    %c0_i32 = arith.constant 0 : i32
    %c0_i32_0 = arith.constant 0 : i32
    %c0_i32_1 = arith.constant 0 : i32
    return %c0_i32, %c0_i32_0 : i32, i32
  }
  func.func @transform_8(%arg0: i32) -> (i32, i32) {
    %c0_i32 = arith.constant 0 : i32
    %c0_i32_0 = arith.constant 0 : i32
    return %arg0, %c0_i32 : i32, i32
  }
}

</mosaic_0001>

<bundles_post_ra>
// kernel: tpu_custom_call.1
= control target key start
LH: loop header
LB: loop body
LE: loop exit
PB: predicated region body
PF: predicated region fallthrough
CT: control target
= control target key end

     0   :  { %13 = vsyncpa [#allocation3], 0  ;;  %s1144_s27 = smov 0   ;;  %s1306_s0 = inlined_call_operand.vmem [shape: f32[128,128], index: 0, kind: input, shape index: {}]   ;;  %s1307_s1 = inlined_call_operand.vmem [shape: f32[128,128], index: 1, kind: input, shape index: {}]   ;;  %s1308_s2 = inlined_call_operand.vmem [shape: f32[128,1], index: 2, kind: input, shape index: {}]   ;;  %s1309_s3 = inlined_call_operand.vmem [shape: f32[1,128], index: 3, kind: input, shape index: {}]   ;;  %s1310_s4 = inlined_call_operand.vmem [shape: s32[128,1], index: 4, kind: input, shape index: {}]   ;;  %s1311_s5 = inlined_call_operand.vmem [shape: s32[1,128], index: 5, kind: input, shape index: {}]   ;;  %s1312_s6 = inlined_call_operand.hbm [shape: f32[128,128], index: 6, kind: input, shape index: {}]   ;;  %s1313_s7 = inlined_call_operand.vmem [shape: f32[1,128], index: 7, kind: input, shape index: {}]   ;;  %s1314_s8 = inlined_call_operand.vmem [shape: f32[128,1], index: 8, kind: output, shape index: {}]  }
   0x1 LB: > { %s1150_s28 = sadd.s32 4294967295, %s1093_s27   ;;  %p822_p0 = scmp.ge.s32.totalorder %s1093_s27, 1  ;;  %s1093_s27 = sphi %s1144_s27, %s19_s27  }
   0x2   : > { %p233_p1 = scmp.lt.s32.totalorder %s1093_s27, 9  ;;  %s1095_s29 = smov [#allocation2]  }
   0x3   : > { %s254_s30 = sshll.u32 %s1095_s29, 4  ;;  %p1315_p3 = scmp.eq.s32.totalorder %s1150_s28, 0  ;;  %s255_s30 = int_to_ptr.vmem [resolvable:$true] %s254_s30 }
   0x4   : > { %p1154_p2 = pnand %p822_p0, %p233_p1  ;;  %s1055_s13 = scalar_lea.hbm %s1312_s6, 2048 }
   0x5   : > { %p1056_p6 = scmp.ne.s32.totalorder %s1312_s6, %s1055_s13  ;;  %p1062_p10 = scmp.lt.u32.totalorder %s1055_s13, %s1312_s6 }
   0x6   : > { %s1317_s9 = scalar_select %p1154_p2, 1, 0 }
   0x7   : > { %p1023_p4 = pneg %p1154_p2 }
   0x9   : > { %p1163_p5 = pnand %p1315_p3, %p1023_p4 }
   0xb   : > { %p1057_p7 = pneg %p1163_p5 }
   0xd   : > { %p1058_p8 = pnand %p1057_p7, %p1056_p6 }
   0xf   : > { %p1059_p9 = pneg %p1058_p8 }
  0x11   : > { %p1064_p11 = pnand %p1062_p10, %p1059_p9 }
  0x13   : > { %1067 = shalt.err (!%p1064_p11)
}
  0x14   : > { %s1068_s18 = scalar_lea.vmem %s255_s30, 2048  ;;  %p1076_p1 = scmp.lt.s32.totalorder %s255_s30, %s255_s30 }
  0x15   : > { %p1069_p12 = scmp.ne.s32.totalorder %s255_s30, %s1068_s18  ;;  %p1077_p4 = scmp.lt.s32.totalorder %s1068_s18, %s1068_s18 }
  0x17   : > { %p1071_p13 = pnand %p1069_p12, %p1057_p7  ;;  %p1078_p3 = por %p1077_p4, %p1076_p1 }
  0x19   : > { %p1072_p0 = pneg %p1071_p13 }
  0x1b   : > { %p1079_p2 = pnand %p1078_p3, %p1072_p0 }
  0x1d   : > { %1082 = shalt.err (!%p1079_p2)
}
  0x1e   : > { %s1096_s19 = smov 128   ;;  %s1097_s20 = smov 8  }
  0x1f   : > { %1026 = dma.hbm_to_vmem [thread:$0]  (!%p1163_p5), %s1312_s6, 2048, %s255_s30, [#allocation3], %s1096_s19, %s1096_s19, %s1097_s20  }
  0x20   : > { %p1319_p6 = scmp.ne.s32.totalorder %s1317_s9, 0 }
  0x21   : > { %p1320_p8 = scmp.eq.s32.totalorder (!%p1319_p6), %s1150_s28, 0 }
  0x22   : > { %300 = sbr.rel (%p1319_p6) target bundleno = 920 (0x398), region = 52 }
  0x29   : > { %1088 = dma.done.wait (%p1320_p8), [#allocation3], 2048   ;;  %p1321_p7 = pmov %p1320_p8 }
  0x2a   : > { %s827_s23 = sshll.u32 %s1150_s28, 1  ;;  %v1098_v0 = vmov 0   ;;  %v379_v1 = vld [vmem:[%s1307_s1] sm:$0xff]  ;;  %v380_v2 = vld [vmem:[%s1307_s1 + $0x8] sm:$0xff]  ;;  %v381_v3 = vld [vmem:[%s1307_s1 + $0x10] sm:$0xff]  ;;  %s835_s10 = sshll.u32 %s1150_s28, 4 }
  0x2b   : > { %1090 = vsyncadd (%p1321_p7), [#allocation3], 4294965248  ;;  %p345_p2 = scmp.lt.s32.totalorder %s827_s23, 15  ;;  %1041 = vset.pattern.permute.xlu0 %v1098_v0  ;;  %1042 = vset.pattern.permute.xlu1 %v1098_v0  ;;  %v955_v4 = vpack.c.bf16 %v380_v2, %v379_v1  ;;  %v382_v5 = vld [vmem:[%s1307_s1 + $0x18] sm:$0xff]  ;;  %v383_v7 = vld [vmem:[%s1307_s1 + $0x20] sm:$0xff] }
  0x2c   : > { %v959_v6 = vpack.c.bf16 %v382_v5, %v381_v3  ;;  %v384_v8 = vld [vmem:[%s1307_s1 + $0x28] sm:$0xff]  ;;  %v385_v10 = vld [vmem:[%s1307_s1 + $0x30] sm:$0xff]  ;;  %v386_v12 = vld [vmem:[%s1307_s1 + $0x38] sm:$0xff]  ;;  %v373_v3 = vlaneseq }
  0x2d   : > { %s1323_s23 = smov (!%p345_p2, %s827_s23), 15  ;;  %956 = vmatprep.subr.bf16.mxu0 %v955_v4  ;;  %v963_v9 = vpack.c.bf16 %v384_v8, %v383_v7  ;;  %v520_v16 = vld [vmem:[#allocation2] sm:$0xff]  ;;  %v521_v17 = vld [vmem:[#allocation2 + $0x8] sm:$0xff]  ;;  %v522_v20 = vld [vmem:[#allocation2 + $0x10] sm:$0xff]  ;;  %v967_v22 = vpack.c.bf16 %v386_v12, %v385_v10  ;;  %v376_v7 = vstv %s835_s10 }
  0x2e   : > { %s1190_s24 = sshll.u32 %s1323_s23, 3  ;;  %958 = vmatpush3.bf16.msra.mxu0 %v955_v4  ;;  %v987_v19 = vpack.c.bf16 %v521_v17, %v520_v16  ;;  %v523_v21 = vld [vmem:[#allocation2 + $0x18] sm:$0xff]  ;;  %v387_v24 = vld [vmem:[%s1307_s1 + $0x40] sm:$0xff]  ;;  %v388_v25 = vld [vmem:[%s1307_s1 + $0x48] sm:$0xff]  ;;  %v1262_v8 = vand.u32 127, %v373_v3 }
  0x2f   : > { %s1214_s19 = scalar_lea.vmem %s1306_s0, %s1190_s24  ;;  %s354_s22 = scalar_lea.vmem %s1308_s2, %s1190_s24  ;;  %960 = vmatprep.subr.bf16.mxu0 %v959_v6  ;;  %v991_v23 = vpack.c.bf16 %v523_v21, %v522_v20  ;;  %v971_v26 = vpack.c.bf16 %v388_v25, %v387_v24  ;;  %v389_v27 = vld [vmem:[%s1307_s1 + $0x50] sm:$0xff]  ;;  %v390_v28 = vld [vmem:[%s1307_s1 + $0x58] sm:$0xff]  ;;  %v391_v30 = vld [vmem:[%s1307_s1 + $0x60] sm:$0xff] }
  0x30   : > { %s360_s26 = scalar_lea.vmem %s1310_s4, %s1190_s24  ;;  %v397_v11 = vld [vmem:[%s1214_s19] sm:$0xff]  ;;  %v371_v15 = vld [vmem:[%s354_s22 + $0x8] sm:$0xff]  ;;  %988 = vmatprep.subr.bf16.mxu1 %v987_v19  ;;  %v975_v29 = vpack.c.bf16 %v390_v28, %v389_v27  ;;  %v393_v33 = vld [vmem:[%s1307_s1 + $0x70] sm:$0xff]  ;;  %vm623_vm1 = vcmp.lt.s32.totalorder %v1262_v8, 40  ;;  %s366_s16 = scalar_lea.vmem %s1314_s8, %s1190_s24 }
  0x31   : > { %917 = vmatprep.mubr.f32.mxu0 %v397_v11  ;;  %v370_v13 = vld [vmem:[%s354_s22] sm:$0xff]  ;;  %v369_v18 = vld [vmem:[%s360_s26 + $0x8] sm:$0xff]  ;;  %990 = vmatpush3.bf16.msra.mxu1 %v987_v19  ;;  %v394_v34 = vld [vmem:[%s1307_s1 + $0x78] sm:$0xff] }
  0x32   : > { %v368_v14 = vld [vmem:[%s360_s26] sm:$0xff]  ;;  %476 = vperm.xlu0 %1041, %v370_v13   ;;  %962 = vmatpush3.bf16.msra.mxu0 %v959_v6  ;;  %v392_v31 = vld [vmem:[%s1307_s1 + $0x68] sm:$0xff]  ;;  %v983_v35 = vpack.c.bf16 %v394_v34, %v393_v33  ;;  %v526_v40 = vld [vmem:[#allocation2 + $0x30] sm:$0xff]  ;;  %v374_v6 = vshrl.u32 %v373_v3, 7 }
  0x33   : > { %616 = vperm.xlu1 %1042, %v368_v14   ;;  %964 = vmatprep.subr.bf16.mxu0 %v963_v9  ;;  %v979_v32 = vpack.c.bf16 %v392_v31, %v391_v30  ;;  %v398_v36 = vld [vmem:[%s1214_s19 + $0x8] sm:$0xff]  ;;  %v524_v37 = vld [vmem:[#allocation2 + $0x20] sm:$0xff]  ;;  %v527_v41 = vld [vmem:[#allocation2 + $0x38] sm:$0xff] }
  0x34   : > { %992 = vmatprep.subr.bf16.mxu1 %v991_v23  ;;  %v525_v38 = vld [vmem:[#allocation2 + $0x28] sm:$0xff]  ;;  %v999_v42 = vpack.c.bf16 %v527_v41, %v526_v40  ;;  %v528_v43 = vld [vmem:[#allocation2 + $0x40] sm:$0xff]  ;;  %v530_v46 = vld [vmem:[#allocation2 + $0x50] sm:$0xff]  ;;  %v375_v11 = vadd.s32 8, %v374_v6  ;;  %v377_v12 = vadd.s32 %v376_v7, %v374_v6 }
  0x35   : > { %994 = vmatpush3.bf16.msra.mxu1 %v991_v23  ;;  %v995_v39 = vpack.c.bf16 %v525_v38, %v524_v37  ;;  %v529_v44 = vld [vmem:[#allocation2 + $0x48] sm:$0xff]  ;;  %v531_v47 = vld [vmem:[#allocation2 + $0x58] sm:$0xff]  ;;  %v532_v49 = vld [vmem:[#allocation2 + $0x60] sm:$0xff] }
  0x36   : > { %481 = vperm.xlu0 %1041, %v371_v15   ;;  %966 = vmatpush3.bf16.msra.mxu0 %v963_v9  ;;  %v1003_v45 = vpack.c.bf16 %v529_v44, %v528_v43  ;;  %v1007_v48 = vpack.c.bf16 %v531_v47, %v530_v46  ;;  %v533_v50 = vld [vmem:[#allocation2 + $0x68] sm:$0xff]  ;;  %v534_v52 = vld [vmem:[#allocation2 + $0x70] sm:$0xff]  ;;  %v535_v53 = vld [vmem:[#allocation2 + $0x78] sm:$0xff]  ;;  %v378_v14 = vadd.s32 %v376_v7, %v375_v11 }
  0x37   : > { %619 = vperm.xlu1 %1042, %v369_v18   ;;  %968 = vmatprep.subr.bf16.mxu0 %v967_v22  ;;  %v1011_v51 = vpack.c.bf16 %v533_v50, %v532_v49  ;;  %v1015_v54 = vpack.c.bf16 %v535_v53, %v534_v52  ;;  %v836_v56 = vld [vmem:[%s1309_s3] ss:$0 sm:$0xff]  ;;  %vm847_vm3 = vcmp.ne.s32.totalorder %v377_v12, %v1262_v8 }
  0x38   : > { %996 = vmatprep.subr.bf16.mxu1 %v995_v39  ;;  %v841_v9 = vld [vmem:[%s1311_s5] ss:$0 sm:$0xff]  ;;  %vm848_vm10 = vcmp.ne.s32.totalorder %v378_v14, %v1262_v8 }
  0x39   : > { %998 = vmatpush3.bf16.msra.mxu1 %v995_v39  ;;  %v842_v41 = vld [vmem:[%s1313_s7] ss:$0 sm:$0xff] }
  0x3a   : > { %970 = vmatpush3.bf16.msra.mxu0 %v967_v22  ;;  %1000 = vmatprep.subr.bf16.mxu1 %v999_v42 }
  0x3b   : > { %972 = vmatprep.subr.bf16.mxu0 %v971_v26 }
  0x3d   : > { %1002 = vmatpush3.bf16.msra.mxu1 %v999_v42 }
  0x3e   : > { %974 = vmatpush3.bf16.msra.mxu0 %v971_v26  ;;  %1004 = vmatprep.subr.bf16.mxu1 %v1003_v45 }
  0x3f   : > { %976 = vmatprep.subr.bf16.mxu0 %v975_v29 }
  0x41   : > { %1006 = vmatpush3.bf16.msra.mxu1 %v1003_v45 }
  0x42   : > { %978 = vmatpush3.bf16.msra.mxu0 %v975_v29  ;;  %1008 = vmatprep.subr.bf16.mxu1 %v1007_v48 }
  0x43   : > { %980 = vmatprep.subr.bf16.mxu0 %v979_v32 }
  0x45   : > { %1010 = vmatpush3.bf16.msra.mxu1 %v1007_v48 }
  0x46   : > { %982 = vmatpush3.bf16.msra.mxu0 %v979_v32  ;;  %1012 = vmatprep.subr.bf16.mxu1 %v1011_v51 }
  0x47   : > { %984 = vmatprep.subr.bf16.mxu0 %v983_v35 }
  0x49   : > { %1014 = vmatpush3.bf16.msra.mxu1 %v1011_v51 }
  0x4a   : > { %986 = vmatpush3.bf16.msra.mxu0 %v983_v35  ;;  %1016 = vmatprep.subr.bf16.mxu1 %v1015_v54 }
  0x4d   : > { %918 = vmatmul.mubr.f32.vlgmr.msra.gmra.mrb[0].mxu0 %v398_v36  ;;  %1018 = vmatpush3.bf16.msra.mxu1 %v1015_v54 }
  0xb1   : > { %v477_v55 = vpop.permute.xlu0 %476 }
  0xb2   : > { %v490_v59 = vadd.f32 %v836_v56, %v477_v55  ;;  %v1259_v5 = vpop.permute.xlu1 %616 }
  0xb3   : > { %vm621_vm2 = vcmp.ne.s32.totalorder %v841_v9, %v1259_v5  ;;  %vm675_vm14 = vcmp.eq.s32.totalorder %v1262_v8, %v1259_v5 }
  0xb4   : > { %vm626_vm8 = vmand %vm621_vm2, %vm623_vm1  ;;  %v689_v44 = vsel %vm675_vm14, %v842_v41, 0.0 }
  0xb5   : > { %v482_v57 = vpop.permute.xlu0 %481 }
  0xb6   : > { %v491_v58 = vadd.f32 %v836_v56, %v482_v57  ;;  %v1267_v10 = vpop.permute.xlu1 %619 }
  0xb7   : > { %vm622_vm0 = vcmp.ne.s32.totalorder %v841_v9, %v1267_v10 }
  0xb8   : > { %vm627_vm5 = vmand %vm622_vm0, %vm623_vm1  ;;  %vm676_vm0 = vcmp.eq.s32.totalorder %v1262_v8, %v1267_v10 }
  0xb9   : > { %v690_v46 = vsel %vm676_vm0, %v842_v41, 0.0 }
 0x120   : > { %v919_v60 = vpop.f32.mrb[0].mxu0 }
 0x121   : > { %v493_v61 = vmul.f32 2.0, %v919_v60  ;;  %v465_v62 = vpop.f32.mrb[1].mxu0 }
 0x122   : > { %v492_v63 = vmul.f32 2.0, %v465_v62 }
 0x123   : > { %v495_v0 = vsub.f32 %v491_v58, %v493_v61 }
 0x124   : > { %v494_v1 = vsub.f32 %v490_v59, %v492_v63 }
 0x125   : > { %v497_v2 = vmax.f32 %v495_v0, 0.0 }
 0x126   : > { %v496_v4 = vmax.f32 %v494_v1, 0.0 }
 0x127   : > { %1043 = vrsqrt.f32 %v497_v2  ;;  %vm507_vm4 = vcmp.eq.f32.partialorder %v497_v2, inf  ;;  %v510_v18 = vand.u32 2147483648, %v497_v2  ;;  %vm509_vm7 = vcmp.eq.f32.partialorder %v497_v2, 0.0 }
 0x128   : > { %1045 = vrsqrt.f32 %v496_v4  ;;  %vm500_vm6 = vcmp.eq.f32.partialorder %v496_v4, inf  ;;  %v503_v19 = vand.u32 2147483648, %v496_v4  ;;  %vm502_vm9 = vcmp.eq.f32.partialorder %v496_v4, 0.0 }
 0x131   : > { %v1044_v13 = vpop.eup %1043 }
 0x132   : > { %v1046_v15 = vpop.eup %1045  ;;  %v506_v16 = vmul.f32 %v1044_v13, %v497_v2 }
 0x133   : > { %v499_v17 = vmul.f32 %v1046_v15, %v496_v4 }
 0x134   : > { %v508_v20 = vsel %vm507_vm4, %v497_v2, %v506_v16 }
 0x135   : > { %v501_v21 = vsel %vm500_vm6, %v496_v4, %v499_v17  ;;  %v511_v22 = vsel %vm509_vm7, %v510_v18, %v508_v20  ;;  %vm725_vm7 = vcmask 7168  }
 0x136   : > { %v504_v23 = vsel %vm502_vm9, %v503_v19, %v501_v21  ;;  %v629_v24 = vsel %vm627_vm5, %v511_v22, inf }
 0x137   : > { %952 = vmatprep.mubr.msk.f32.mxu1 %vm847_vm3, %v504_v23  ;;  %632 = vmin.xlane.f32.xlu1 %v629_v24  ;;  %v628_v25 = vsel %vm626_vm8, %v504_v23, inf }
 0x138   : > { %953 = vmatmul.mubr.msk.f32.vlgmr.msra.gmra.mrb[0].mxu1 %vm848_vm10, %v511_v22  ;;  %630 = vmin.xlane.f32.xlu0 %v628_v25 }
 0x1c4   : > { %v633_v26 = vpop.xlane.xlu1 %632 }
 0x1c5   : > { %vm635_vm11 = vcmp.eq.f32.partialorder %v629_v24, %v633_v26  ;;  %v631_v27 = vpop.xlane.xlu0 %630  ;;  %vm669_vm4 = vcmp.eq.f32.partialorder %v633_v26, inf  ;;  %vm667_vm5 = vcmp.lt.f32.partialorder %v633_v26, inf }
 0x1c6   : > { %vm634_vm12 = vcmp.eq.f32.partialorder %v628_v25, %v631_v27  ;;  %v637_v29 = vsel %vm635_vm11, %v841_v9, 2147483647  ;;  %vm668_vm1 = vcmp.eq.f32.partialorder %v631_v27, inf  ;;  %vm666_vm2 = vcmp.lt.f32.partialorder %v631_v27, inf }
 0x1c7   : > { %v636_v28 = vsel %vm634_vm12, %v841_v9, 2147483647  ;;  %v653_v32 = vshra.s32 %v637_v29, 16  ;;  %v652_v39 = vand.u32 65535, %v637_v29 }
 0x1c8   : > { %v639_v30 = vshra.s32 %v636_v28, 16  ;;  %v638_v36 = vand.u32 65535, %v636_v28 }
 0x1c9   : > { %v655_v33 = vcvt.s32.f32 %v653_v32  ;;  %v654_v43 = vcvt.s32.f32 %v652_v39 }
 0x1ca   : > { %v641_v31 = vcvt.s32.f32 %v639_v30  ;;  %v640_v38 = vcvt.s32.f32 %v638_v36 }
 0x1cc   : > { %642 = vmin.xlane.f32.xlu0 %v641_v31 }
 0x1d0   : > { %656 = vmin.xlane.f32.xlu0 %v655_v33 }
 0x20b   : > { %v954_v34 = vpop.f32.mrb[0].mxu1 }
 0x20c   : > { %v602_v35 = vpop.f32.mrb[1].mxu1  ;;  %v678_v1 = vsel %vm676_vm0, %v954_v34, 0.0 }
 0x20d   : > { %v677_v0 = vsel %vm675_vm14, %v602_v35, 0.0 }
 0x259   : > { %v643_v37 = vpop.xlane.xlu0 %642 }
 0x25a   : > { %vm644_vm13 = vcmp.eq.f32.partialorder %v641_v31, %v643_v37  ;;  %v649_v47 = vcvt.f32.s32 %v643_v37 }
 0x25b   : > { %v645_v40 = vsel %vm644_vm13, %v640_v38, inf }
 0x25c   : > { %646 = vmin.xlane.f32.xlu1 %v645_v40  ;;  %v650_v49 = vshll.u32 %v649_v47, 16 }
 0x25d   : > { %v657_v42 = vpop.xlane.xlu0 %656 }
 0x25e   : > { %vm658_vm15 = vcmp.eq.f32.partialorder %v655_v33, %v657_v42  ;;  %v663_v50 = vcvt.f32.s32 %v657_v42 }
 0x25f   : > { %v659_v45 = vsel %vm658_vm15, %v654_v43, inf }
 0x260   : > { %691 = vadd.xlane.f32.xlu1 %v689_v44  ;;  %660 = vmin.xlane.f32.xlu0 %v659_v45  ;;  %v664_v54 = vshll.u32 %v663_v50, 16 }
 0x264   : > { %693 = vadd.xlane.f32.xlu0 %v690_v46 }
 0x2e9   : > { %v647_v48 = vpop.xlane.xlu1 %646 }
 0x2ea   : > { %v648_v51 = vcvt.f32.s32 %v647_v48 }
 0x2ec   : > { %v651_v52 = vadd.s32 %v650_v49, %v648_v51 }
 0x2ed   : > { %v661_v53 = vpop.xlane.xlu0 %660  ;;  %v692_v3 = vpop.xlane.xlu1 %691 }
 0x2ee   : > { %v670_v55 = vsel %vm668_vm1, %v651_v52, 2147483647  ;;  %v662_v56 = vcvt.f32.s32 %v661_v53  ;;  %v843_v4 = vadd.f32 -1.0, %v692_v3 }
 0x2ef   : > { %v672_v57 = vsel %vm666_vm2, %v651_v52, %v670_v55 }
 0x2f0   : > { %v665_v58 = vadd.s32 %v664_v54, %v662_v56  ;;  %vm697_vm3 = vcmp.eq.s32.totalorder %v1262_v8, %v672_v57  ;;  %1047 = vrcp.f32 %v843_v4 }
 0x2f1   : > { %v705_v59 = vsel %vm697_vm3, %v842_v41, 0.0  ;;  %v699_v60 = vsel %vm697_vm3, %v602_v35, 0.0  ;;  %v694_v6 = vpop.xlane.xlu0 %693 }
 0x2f2   : > { %v671_v61 = vsel %vm669_vm4, %v665_v58, 2147483647  ;;  %707 = vadd.xlane.f32.xlu1 %v705_v59  ;;  %v844_v7 = vadd.f32 -1.0, %v694_v6 }
 0x2f3   : > { %v673_v62 = vsel %vm667_vm5, %v665_v58, %v671_v61 }
 0x2f4   : > { %vm698_vm6 = vcmp.eq.s32.totalorder %v1262_v8, %v673_v62 }
 0x2f5   : > { %v706_v63 = vsel %vm698_vm6, %v842_v41, 0.0  ;;  %v700_v2 = vsel %vm698_vm6, %v954_v34, 0.0 }
 0x2f6   : > { %709 = vadd.xlane.f32.xlu0 %v706_v63  ;;  %679 = vadd.xlane.f32.xlu1 %v677_v0 }
 0x2fa   : > { %681 = vadd.xlane.f32.xlu0 %v678_v1  ;;  %701 = vadd.xlane.f32.xlu1 %v699_v60  ;;  %v1048_v13 = vpop.eup %1047 }
 0x2fe   : > { %703 = vadd.xlane.f32.xlu0 %v700_v2 }
 0x37f   : > { %v708_v9 = vpop.xlane.xlu1 %707 }
 0x380   : > { %1049 = vrcp.f32 %v708_v9 }
 0x381   : > { %1051 = vrcp.f32 %v844_v7 }
 0x383   : > { %v710_v5 = vpop.xlane.xlu0 %709  ;;  %v680_v11 = vpop.xlane.xlu1 %679 }
 0x384   : > { %1053 = vrcp.f32 %v710_v5  ;;  %v712_v14 = vmul.f32 %v1048_v13, %v680_v11 }
 0x387   : > { %v682_v12 = vpop.xlane.xlu0 %681  ;;  %v702_v10 = vpop.xlane.xlu1 %701 }
 0x38a   : > { %v1050_v8 = vpop.eup %1049 }
 0x38b   : > { %v716_v15 = vmul.f32 %v1050_v8, %v702_v10  ;;  %v1052_v16 = vpop.eup %1051  ;;  %v704_v19 = vpop.xlane.xlu0 %703 }
 0x38c   : > { %v714_v20 = vmul.f32 %v1052_v16, %v682_v12 }
 0x38d   : > { %v719_v17 = vsub.f32 %v712_v14, %v716_v15 }
 0x38e   : > { %v1054_v18 = vpop.eup %1053 }
 0x38f   : > { %v721_v21 = vadd.f32 1.0, %v719_v17  ;;  %v718_v22 = vmul.f32 %v1054_v18, %v704_v19 }
 0x391   : > { %v723_v23 = vmax.f32 %v721_v21, 0.0  ;;  %v720_v24 = vsub.f32 %v714_v20, %v718_v22 }
 0x393   : > { %726 = vst.msk [vmem:[%s366_s16] sm:$0xff] %vm725_vm7, %v723_v23  ;;  %v722_v25 = vadd.f32 1.0, %v720_v24 }
 0x395   : > { %v724_v26 = vmax.f32 %v722_v25, 0.0 }
 0x397   : > { %727 = vst.msk [vmem:[%s366_s16 + $0x8] sm:$0xff] %vm725_vm7, %v724_v26 }
 0x398 PF: > { %s19_s27 = sadd.s32 1, %s1093_s27  }
 0x399   : > { %p16_p3 = scmp.ge.s32.totalorder %s19_s27, 10  }
 0x39b   :  { %18 = sbr.rel (!%p16_p3) target bundleno = 1 (0x1), region = 93 }
 0x3a2   :  { %750 = vsyncpa [#allocation3], 1 }
 0x3a3   :  { %752 = vsyncpa [#allocation3 + $0x1], 1 }

</bundles_post_ra>
